<compile_context>
chip_gen: v5e
topology: v5e:2x2
jax: 0.10.0
libtpu: 0.0.40
codegen_flags: <defaults>
</compile_context>

<pallas_src>
import jax
import jax.numpy as jnp
from jax import lax
from jax.experimental import pallas as pl
from jax.experimental.pallas import tpu as pltpu

EPS = 1e-5  # nn.InstanceNorm2d default


def make_resnet_block_kernel(H, W, K, R, matmul_dtype=jnp.float32):
    HW = H * W
    inv_hw = 1.0 / float(HW)
    P = (K - 1) // 2
    # flat spatial offset of each tap, tap order = kh*K + kw
    offsets = [(kh - P) * W + (kw - P) for kh in range(K) for kw in range(K)]

    def inorm(y):
        # centered (mean-shifted) variance: safe even for un-normalized inputs
        mean = jnp.sum(y, axis=1, keepdims=True) * inv_hw
        ym = y - mean
        var = jnp.sum(ym * ym, axis=1, keepdims=True) * inv_hw
        return ym * lax.rsqrt(var + EPS)

    def conv(x, w_ref, masks):
        # K*K lane rotations (XLU) + mask muls (VPU), stacked along sublanes
        # into a single (K*K*R, HW) operand -> ONE MXU matmul per conv.
        taps = []
        for t, d in enumerate(offsets):
            shifted = x if d == 0 else pltpu.roll(x, (-d) % HW, axis=1)
            taps.append(shifted * masks[t])          # in-register zero padding
        stacked = jnp.concatenate(taps, axis=0).astype(matmul_dtype)
        return jnp.dot(w_ref[...], stacked, preferred_element_type=jnp.float32)

    def kernel(x_ref, w1_ref, w2_ref, mask_ref, out_ref):
        x = x_ref[...]                                   # (R, HW) f32
        m = mask_ref[...]                                # (K*K, HW) 0/1 f32
        masks = [m[t:t + 1, :] for t in range(K * K)]    # hoisted, reused by both convs

        h = jnp.maximum(inorm(conv(x, w1_ref, masks)), 0.0)   # conv1 -> IN -> ReLU
        h = inorm(conv(h, w2_ref, masks))                     # conv2 -> IN
        out_ref[...] = x + h                                  # residual, lane-dense store

    return kernel


def resnet_block_forward(x_nchw, w1, b1, w2, b2, padding,
                         samples_per_step=None, matmul_dtype=jnp.float32):
    """x_nchw: (N, C, H, W) as in PyTorch. w*: (Cout, Cin, kH, kW), b*: (C,).

    b1/b2 are accepted for interface parity but never reach the kernel: each
    conv feeds an affine-free InstanceNorm, whose per-(sample,channel) mean
    subtraction cancels any per-channel bias exactly.
    """
    del b1, b2  # mathematically cancelled by the following InstanceNorm
    N, C, H, W = x_nchw.shape
    K = w1.shape[-1]
    assert K % 2 == 1, "kernel size must be odd for a shape-preserving conv"
    assert padding == (K - 1) // 2, "residual add needs shape-preserving conv"
    HW = H * W

    # Fold G samples per grid step, preferring grid_n >= 2 so the "parallel"
    # batch axis can shard across multiple TensorCores (v7x has 2 TCs/chip).
    if samples_per_step is None:
        G = 1
        for g in range(N, 0, -1):
            if N % g == 0 and (N // g >= 2 or g == 1):
                G = g
                break
    else:
        G = samples_per_step
        assert N % G == 0
    grid_n = N // G
    R = G * C

    # NCHW -> (grid_n, G*C, H*W): a pure reshape (no transpose, no HBM pad).
    x2d = x_nchw.reshape(grid_n, R, HW).astype(jnp.float32)

    def stack_weights(w):
        # (Cout, Cin, kH, kW) -> per-tap (K*K, C, C); block-diagonal over the G
        # folded samples only when G > 1 (avoids G^2*C^2 growth otherwise).
        w_t = jnp.transpose(w, (2, 3, 0, 1)).reshape(K * K, C, C).astype(jnp.float32)
        if G > 1:
            eye = jnp.eye(G, dtype=jnp.float32)
            w_t = jnp.einsum('gh,tij->tgihj', eye, w_t).reshape(K * K, R, R)
        # row r, column t*R + c -> (R, K*K*R): one matmul covers all taps
        return jnp.transpose(w_t, (1, 0, 2)).reshape(R, K * K * R).astype(matmul_dtype)

    w1_stk = stack_weights(w1)
    w2_stk = stack_weights(w2)

    # Precomputed boundary masks (conv zero padding), one row per tap.
    P = (K - 1) // 2
    s = jnp.arange(HW, dtype=jnp.int32)
    hh, ww = s // W, s % W
    mask_rows = []
    for kh in range(K):
        for kw in range(K):
            dh, dw = kh - P, kw - P
            mask_rows.append((hh + dh >= 0) & (hh + dh < H) &
                             (ww + dw >= 0) & (ww + dw < W))
    mask_arr = jnp.stack(mask_rows, axis=0).astype(jnp.float32)      # (K*K, HW)

    kernel = make_resnet_block_kernel(H, W, K, R, matmul_dtype)

    # Explicit VMEM budget once blocks get large: in+out activations are
    # double-buffered by the pipeline; weights/mask are small constants.
    f32b = 4
    act_bytes = R * HW * f32b
    w_bytes = R * (K * K * R) * jnp.dtype(matmul_dtype).itemsize
    budget = 2 * 2 * act_bytes + 2 * 2 * w_bytes + 2 * mask_arr.size * f32b
    vmem_limit = int(1.5 * budget) if budget > (28 << 20) else None

    out = pl.pallas_call(
        kernel,
        out_shape=jax.ShapeDtypeStruct((grid_n, R, HW), jnp.float32),
        grid_spec=pltpu.PrefetchScalarGridSpec(
            num_scalar_prefetch=0,
            grid=(grid_n,),
            in_specs=[
                pl.BlockSpec((pl.Squeezed(), R, HW), lambda n: (n, 0, 0)),
                pl.BlockSpec((R, K * K * R), lambda n: (0, 0)),
                pl.BlockSpec((R, K * K * R), lambda n: (0, 0)),
                pl.BlockSpec((K * K, HW), lambda n: (0, 0)),
            ],
            out_specs=pl.BlockSpec((pl.Squeezed(), R, HW), lambda n: (n, 0, 0)),
        ),
        compiler_params=pltpu.CompilerParams(
            dimension_semantics=("parallel",),   # batch axis is independent
            vmem_limit_bytes=vmem_limit),
    )(x2d, w1_stk, w2_stk, mask_arr)

    return out.reshape(N, C, H, W)


def ref_forward(x, w1, b1, w2, b2, padding):
    """Pure-JAX reference matching the PyTorch module (NCHW), biases included."""
    def conv(x, w, b):
        y = lax.conv_general_dilated(
            x, w, window_strides=(1, 1),
            padding=[(padding, padding), (padding, padding)],
            dimension_numbers=('NCHW', 'OIHW', 'NCHW'))
        return y + b.reshape(1, -1, 1, 1)

    def inorm(x):
        m = jnp.mean(x, axis=(2, 3), keepdims=True)
        v = jnp.mean((x - m) ** 2, axis=(2, 3), keepdims=True)
        return (x - m) * lax.rsqrt(v + EPS)

    h = jnp.maximum(inorm(conv(x, w1, b1)), 0.0)
    h = inorm(conv(h, w2, b2))
    return x + h


if __name__ == "__main__":
    N, C, H, W = 2, 4, 16, 16
    K, stride, padding = 3, 1, 1

    key = jax.random.PRNGKey(0)
    k_x, k_w1, k_w2 = jax.random.split(key, 3)
    x = jax.random.normal(k_x, (N, C, H, W), jnp.float32)
    # deterministic init mirroring initialize_weights: weight ~ N(0, 0.02), bias = 0
    w1 = 0.02 * jax.random.normal(k_w1, (C, C, K, K), jnp.float32)
    w2 = 0.02 * jax.random.normal(k_w2, (C, C, K, K), jnp.float32)
    b1 = jnp.zeros((C,), jnp.float32)
    b2 = jnp.zeros((C,), jnp.float32)

    out = resnet_block_forward(x, w1, b1, w2, b2, padding)
    out = jax.block_until_ready(out)

    ref = ref_forward(x, w1, b1, w2, b2, padding)
    err = float(jnp.max(jnp.abs(out - ref)))
    assert jnp.allclose(out, ref, atol=1e-4, rtol=1e-4), f"max abs err = {err}"

    print("KERNEL_OK")
</pallas_src>

<mosaic_0001>
module attributes {stable_mosaic.version = 11 : i64} {
  func.func @kernel(%arg0: i32, %arg1: memref<1x4x256xf32, #tpu.memory_space<vmem>>, %arg2: memref<4x36xf32, #tpu.memory_space<vmem>>, %arg3: memref<4x36xf32, #tpu.memory_space<vmem>>, %arg4: memref<9x256xf32, #tpu.memory_space<vmem>>, %arg5: memref<1x4x256xf32, #tpu.memory_space<vmem>>) attributes {dimension_semantics = [#tpu.dimension_semantics<parallel>], iteration_bounds = array<i64: 2>, scalar_prefetch = 0 : i64, scratch_operands = 0 : i64, tpu.core_type = #tpu.core_type<tc>, window_params = [{transform_indices = @transform_0, window_bounds = array<i64: 1, 4, 256>}, {pipeline_mode = #tpu.pipeline_mode<synchronous>, transform_indices = @transform_1, window_bounds = array<i64: 4, 36>}, {pipeline_mode = #tpu.pipeline_mode<synchronous>, transform_indices = @transform_2, window_bounds = array<i64: 4, 36>}, {pipeline_mode = #tpu.pipeline_mode<synchronous>, transform_indices = @transform_3, window_bounds = array<i64: 9, 256>}, {transform_indices = @transform_4, window_bounds = array<i64: 1, 4, 256>}]} {
    %c0 = arith.constant 0 : index
    %c0_0 = arith.constant 0 : index
    %c0_1 = arith.constant 0 : index
    %0 = vector.load %arg1[%c0, %c0_0, %c0_1] : memref<1x4x256xf32, #tpu.memory_space<vmem>>, vector<1x4x256xf32>
    %1 = vector.shape_cast %0 : vector<1x4x256xf32> to vector<4x256xf32>
    %c0_2 = arith.constant 0 : index
    %c0_3 = arith.constant 0 : index
    %2 = vector.load %arg4[%c0_2, %c0_3] : memref<9x256xf32, #tpu.memory_space<vmem>>, vector<9x256xf32>
    %3 = vector.extract_strided_slice %2 {offsets = [0, 0], sizes = [1, 256], strides = [1, 1]} : vector<9x256xf32> to vector<1x256xf32>
    %4 = vector.extract_strided_slice %2 {offsets = [1, 0], sizes = [1, 256], strides = [1, 1]} : vector<9x256xf32> to vector<1x256xf32>
    %5 = vector.extract_strided_slice %2 {offsets = [2, 0], sizes = [1, 256], strides = [1, 1]} : vector<9x256xf32> to vector<1x256xf32>
    %6 = vector.extract_strided_slice %2 {offsets = [3, 0], sizes = [1, 256], strides = [1, 1]} : vector<9x256xf32> to vector<1x256xf32>
    %7 = vector.extract_strided_slice %2 {offsets = [4, 0], sizes = [1, 256], strides = [1, 1]} : vector<9x256xf32> to vector<1x256xf32>
    %8 = vector.extract_strided_slice %2 {offsets = [5, 0], sizes = [1, 256], strides = [1, 1]} : vector<9x256xf32> to vector<1x256xf32>
    %9 = vector.extract_strided_slice %2 {offsets = [6, 0], sizes = [1, 256], strides = [1, 1]} : vector<9x256xf32> to vector<1x256xf32>
    %10 = vector.extract_strided_slice %2 {offsets = [7, 0], sizes = [1, 256], strides = [1, 1]} : vector<9x256xf32> to vector<1x256xf32>
    %11 = vector.extract_strided_slice %2 {offsets = [8, 0], sizes = [1, 256], strides = [1, 1]} : vector<9x256xf32> to vector<1x256xf32>
    %c17_i32 = arith.constant 17 : i32
    %12 = tpu.dynamic_rotate %1 by %c17_i32 dim 1 : vector<4x256xf32>, i32 -> vector<4x256xf32>
    %13 = vector.broadcast %3 : vector<1x256xf32> to vector<4x256xf32>
    %14 = arith.mulf %12, %13 : vector<4x256xf32>
    %c16_i32 = arith.constant 16 : i32
    %15 = tpu.dynamic_rotate %1 by %c16_i32 dim 1 : vector<4x256xf32>, i32 -> vector<4x256xf32>
    %16 = vector.broadcast %4 : vector<1x256xf32> to vector<4x256xf32>
    %17 = arith.mulf %15, %16 : vector<4x256xf32>
    %c15_i32 = arith.constant 15 : i32
    %18 = tpu.dynamic_rotate %1 by %c15_i32 dim 1 : vector<4x256xf32>, i32 -> vector<4x256xf32>
    %19 = vector.broadcast %5 : vector<1x256xf32> to vector<4x256xf32>
    %20 = arith.mulf %18, %19 : vector<4x256xf32>
    %c1_i32 = arith.constant 1 : i32
    %21 = tpu.dynamic_rotate %1 by %c1_i32 dim 1 : vector<4x256xf32>, i32 -> vector<4x256xf32>
    %22 = vector.broadcast %6 : vector<1x256xf32> to vector<4x256xf32>
    %23 = arith.mulf %21, %22 : vector<4x256xf32>
    %24 = vector.broadcast %7 : vector<1x256xf32> to vector<4x256xf32>
    %25 = arith.mulf %1, %24 : vector<4x256xf32>
    %c255_i32 = arith.constant 255 : i32
    %26 = tpu.dynamic_rotate %1 by %c255_i32 dim 1 : vector<4x256xf32>, i32 -> vector<4x256xf32>
    %27 = vector.broadcast %8 : vector<1x256xf32> to vector<4x256xf32>
    %28 = arith.mulf %26, %27 : vector<4x256xf32>
    %c241_i32 = arith.constant 241 : i32
    %29 = tpu.dynamic_rotate %1 by %c241_i32 dim 1 : vector<4x256xf32>, i32 -> vector<4x256xf32>
    %30 = vector.broadcast %9 : vector<1x256xf32> to vector<4x256xf32>
    %31 = arith.mulf %29, %30 : vector<4x256xf32>
    %c240_i32 = arith.constant 240 : i32
    %32 = tpu.dynamic_rotate %1 by %c240_i32 dim 1 : vector<4x256xf32>, i32 -> vector<4x256xf32>
    %33 = vector.broadcast %10 : vector<1x256xf32> to vector<4x256xf32>
    %34 = arith.mulf %32, %33 : vector<4x256xf32>
    %c239_i32 = arith.constant 239 : i32
    %35 = tpu.dynamic_rotate %1 by %c239_i32 dim 1 : vector<4x256xf32>, i32 -> vector<4x256xf32>
    %36 = vector.broadcast %11 : vector<1x256xf32> to vector<4x256xf32>
    %37 = arith.mulf %35, %36 : vector<4x256xf32>
    %38 = tpu.concatenate %14, %17, %20, %23, %25, %28, %31, %34, %37 in 0 : vector<4x256xf32>, vector<4x256xf32>, vector<4x256xf32>, vector<4x256xf32>, vector<4x256xf32>, vector<4x256xf32>, vector<4x256xf32>, vector<4x256xf32>, vector<4x256xf32> -> vector<36x256xf32>
    %c0_4 = arith.constant 0 : index
    %c0_5 = arith.constant 0 : index
    %39 = vector.load %arg2[%c0_4, %c0_5] : memref<4x36xf32, #tpu.memory_space<vmem>>, vector<4x36xf32>
    %cst = arith.constant dense<0.000000e+00> : vector<4x256xf32>
    %40 = tpu.matmul %39, %38, %cst {dimension_numbers = #tpu.dot_dimension_numbers<[1], [0], [0], [1], [0, 0, 1, 1], [], []>} : vector<4x36xf32>, vector<36x256xf32>, vector<4x256xf32> -> vector<4x256xf32>
    %cst_6 = arith.constant dense<0.000000e+00> : vector<4xf32>
    %41 = vector.multi_reduction <add>, %40, %cst_6 [1] : vector<4x256xf32> to vector<4xf32>
    %42 = vector.shape_cast %41 : vector<4xf32> to vector<4x1xf32>
    %cst_7 = arith.constant 3.906250e-03 : f32
    %43 = vector.broadcast %cst_7 : f32 to vector<4x1xf32>
    %44 = arith.mulf %42, %43 : vector<4x1xf32>
    %45 = vector.broadcast %44 : vector<4x1xf32> to vector<4x256xf32>
    %46 = arith.subf %40, %45 : vector<4x256xf32>
    %47 = arith.mulf %46, %46 : vector<4x256xf32>
    %cst_8 = arith.constant dense<0.000000e+00> : vector<4xf32>
    %48 = vector.multi_reduction <add>, %47, %cst_8 [1] : vector<4x256xf32> to vector<4xf32>
    %49 = vector.shape_cast %48 : vector<4xf32> to vector<4x1xf32>
    %cst_9 = arith.constant 3.906250e-03 : f32
    %50 = vector.broadcast %cst_9 : f32 to vector<4x1xf32>
    %51 = arith.mulf %49, %50 : vector<4x1xf32>
    %cst_10 = arith.constant 9.99999974E-6 : f32
    %52 = vector.broadcast %cst_10 : f32 to vector<4x1xf32>
    %53 = arith.addf %51, %52 : vector<4x1xf32>
    %54 = math.rsqrt %53 : vector<4x1xf32>
    %55 = vector.broadcast %54 : vector<4x1xf32> to vector<4x256xf32>
    %56 = arith.mulf %46, %55 : vector<4x256xf32>
    %cst_11 = arith.constant 0.000000e+00 : f32
    %57 = vector.broadcast %cst_11 : f32 to vector<4x256xf32>
    %58 = arith.maximumf %56, %57 : vector<4x256xf32>
    %c17_i32_12 = arith.constant 17 : i32
    %59 = tpu.dynamic_rotate %58 by %c17_i32_12 dim 1 : vector<4x256xf32>, i32 -> vector<4x256xf32>
    %60 = vector.broadcast %3 : vector<1x256xf32> to vector<4x256xf32>
    %61 = arith.mulf %59, %60 : vector<4x256xf32>
    %c16_i32_13 = arith.constant 16 : i32
    %62 = tpu.dynamic_rotate %58 by %c16_i32_13 dim 1 : vector<4x256xf32>, i32 -> vector<4x256xf32>
    %63 = vector.broadcast %4 : vector<1x256xf32> to vector<4x256xf32>
    %64 = arith.mulf %62, %63 : vector<4x256xf32>
    %c15_i32_14 = arith.constant 15 : i32
    %65 = tpu.dynamic_rotate %58 by %c15_i32_14 dim 1 : vector<4x256xf32>, i32 -> vector<4x256xf32>
    %66 = vector.broadcast %5 : vector<1x256xf32> to vector<4x256xf32>
    %67 = arith.mulf %65, %66 : vector<4x256xf32>
    %c1_i32_15 = arith.constant 1 : i32
    %68 = tpu.dynamic_rotate %58 by %c1_i32_15 dim 1 : vector<4x256xf32>, i32 -> vector<4x256xf32>
    %69 = vector.broadcast %6 : vector<1x256xf32> to vector<4x256xf32>
    %70 = arith.mulf %68, %69 : vector<4x256xf32>
    %71 = vector.broadcast %7 : vector<1x256xf32> to vector<4x256xf32>
    %72 = arith.mulf %58, %71 : vector<4x256xf32>
    %c255_i32_16 = arith.constant 255 : i32
    %73 = tpu.dynamic_rotate %58 by %c255_i32_16 dim 1 : vector<4x256xf32>, i32 -> vector<4x256xf32>
    %74 = vector.broadcast %8 : vector<1x256xf32> to vector<4x256xf32>
    %75 = arith.mulf %73, %74 : vector<4x256xf32>
    %c241_i32_17 = arith.constant 241 : i32
    %76 = tpu.dynamic_rotate %58 by %c241_i32_17 dim 1 : vector<4x256xf32>, i32 -> vector<4x256xf32>
    %77 = vector.broadcast %9 : vector<1x256xf32> to vector<4x256xf32>
    %78 = arith.mulf %76, %77 : vector<4x256xf32>
    %c240_i32_18 = arith.constant 240 : i32
    %79 = tpu.dynamic_rotate %58 by %c240_i32_18 dim 1 : vector<4x256xf32>, i32 -> vector<4x256xf32>
    %80 = vector.broadcast %10 : vector<1x256xf32> to vector<4x256xf32>
    %81 = arith.mulf %79, %80 : vector<4x256xf32>
    %c239_i32_19 = arith.constant 239 : i32
    %82 = tpu.dynamic_rotate %58 by %c239_i32_19 dim 1 : vector<4x256xf32>, i32 -> vector<4x256xf32>
    %83 = vector.broadcast %11 : vector<1x256xf32> to vector<4x256xf32>
    %84 = arith.mulf %82, %83 : vector<4x256xf32>
    %85 = tpu.concatenate %61, %64, %67, %70, %72, %75, %78, %81, %84 in 0 : vector<4x256xf32>, vector<4x256xf32>, vector<4x256xf32>, vector<4x256xf32>, vector<4x256xf32>, vector<4x256xf32>, vector<4x256xf32>, vector<4x256xf32>, vector<4x256xf32> -> vector<36x256xf32>
    %c0_20 = arith.constant 0 : index
    %c0_21 = arith.constant 0 : index
    %86 = vector.load %arg3[%c0_20, %c0_21] : memref<4x36xf32, #tpu.memory_space<vmem>>, vector<4x36xf32>
    %cst_22 = arith.constant dense<0.000000e+00> : vector<4x256xf32>
    %87 = tpu.matmul %86, %85, %cst_22 {dimension_numbers = #tpu.dot_dimension_numbers<[1], [0], [0], [1], [0, 0, 1, 1], [], []>} : vector<4x36xf32>, vector<36x256xf32>, vector<4x256xf32> -> vector<4x256xf32>
    %cst_23 = arith.constant dense<0.000000e+00> : vector<4xf32>
    %88 = vector.multi_reduction <add>, %87, %cst_23 [1] : vector<4x256xf32> to vector<4xf32>
    %89 = vector.shape_cast %88 : vector<4xf32> to vector<4x1xf32>
    %cst_24 = arith.constant 3.906250e-03 : f32
    %90 = vector.broadcast %cst_24 : f32 to vector<4x1xf32>
    %91 = arith.mulf %89, %90 : vector<4x1xf32>
    %92 = vector.broadcast %91 : vector<4x1xf32> to vector<4x256xf32>
    %93 = arith.subf %87, %92 : vector<4x256xf32>
    %94 = arith.mulf %93, %93 : vector<4x256xf32>
    %cst_25 = arith.constant dense<0.000000e+00> : vector<4xf32>
    %95 = vector.multi_reduction <add>, %94, %cst_25 [1] : vector<4x256xf32> to vector<4xf32>
    %96 = vector.shape_cast %95 : vector<4xf32> to vector<4x1xf32>
    %cst_26 = arith.constant 3.906250e-03 : f32
    %97 = vector.broadcast %cst_26 : f32 to vector<4x1xf32>
    %98 = arith.mulf %96, %97 : vector<4x1xf32>
    %cst_27 = arith.constant 9.99999974E-6 : f32
    %99 = vector.broadcast %cst_27 : f32 to vector<4x1xf32>
    %100 = arith.addf %98, %99 : vector<4x1xf32>
    %101 = math.rsqrt %100 : vector<4x1xf32>
    %102 = vector.broadcast %101 : vector<4x1xf32> to vector<4x256xf32>
    %103 = arith.mulf %93, %102 : vector<4x256xf32>
    %104 = arith.addf %1, %103 : vector<4x256xf32>
    %c0_28 = arith.constant 0 : index
    %c0_29 = arith.constant 0 : index
    %c0_30 = arith.constant 0 : index
    %105 = vector.load %arg5[%c0_28, %c0_29, %c0_30] : memref<1x4x256xf32, #tpu.memory_space<vmem>>, vector<1x4x256xf32>
    %106 = vector.shape_cast %105 : vector<1x4x256xf32> to vector<4x256xf32>
    %107 = vector.shape_cast %104 : vector<4x256xf32> to vector<1x4x256xf32>
    tpu.vector_store %arg5[%c0_28, %c0_29, %c0_30], %107 {strides = array<i32>} : memref<1x4x256xf32, #tpu.memory_space<vmem>>, vector<1x4x256xf32>,
    return
  }
  func.func @transform_0(%arg0: i32) -> (i32, i32, i32) {
    %c0_i32 = arith.constant 0 : i32
    %c0_i32_0 = arith.constant 0 : i32
    %c0_i32_1 = arith.constant 0 : i32
    return %arg0, %c0_i32, %c0_i32_0 : i32, i32, i32
  }
  func.func @transform_1(%arg0: i32) -> (i32, i32) {
    %c0_i32 = arith.constant 0 : i32
    %c0_i32_0 = arith.constant 0 : i32
    %c0_i32_1 = arith.constant 0 : i32
    return %c0_i32, %c0_i32_0 : i32, i32
  }
  func.func @transform_2(%arg0: i32) -> (i32, i32) {
    %c0_i32 = arith.constant 0 : i32
    %c0_i32_0 = arith.constant 0 : i32
    %c0_i32_1 = arith.constant 0 : i32
    return %c0_i32, %c0_i32_0 : i32, i32
  }
  func.func @transform_3(%arg0: i32) -> (i32, i32) {
    %c0_i32 = arith.constant 0 : i32
    %c0_i32_0 = arith.constant 0 : i32
    %c0_i32_1 = arith.constant 0 : i32
    return %c0_i32, %c0_i32_0 : i32, i32
  }
  func.func @transform_4(%arg0: i32) -> (i32, i32, i32) {
    %c0_i32 = arith.constant 0 : i32
    %c0_i32_0 = arith.constant 0 : i32
    %c0_i32_1 = arith.constant 0 : i32
    return %arg0, %c0_i32, %c0_i32_0 : i32, i32, i32
  }
}

</mosaic_0001>

<bundles_post_ra>
// kernel: tpu_custom_call.1
= control target key start
LH: loop header
LB: loop body
LE: loop exit
PB: predicated region body
PF: predicated region fallthrough
CT: control target
= control target key end

     0   :  { %9 = vsyncpa [#allocation3], 0  ;;  %s1594_s0 = inlined_call_operand.hbm [shape: f32[2,4,256], index: 0, kind: input, shape index: {}]   ;;  %s1595_s1 = inlined_call_operand.hbm [shape: f32[4,36], index: 1, kind: input, shape index: {}]   ;;  %s1596_s2 = inlined_call_operand.hbm [shape: f32[4,36], index: 2, kind: input, shape index: {}]   ;;  %s1597_s3 = inlined_call_operand.hbm [shape: f32[9,256], index: 3, kind: input, shape index: {}]   ;;  %s1598_s4 = inlined_call_operand.hbm [shape: f32[2,4,256], index: 4, kind: output, shape index: {}]  }
   0x1   :  { %11 = vsyncpa [#allocation3 + $0x1], 0 }
   0x2   :  { %12 = vsyncpa [#allocation6], 0 }
   0x3   :  { %13 = vsyncpa [#allocation9], 0 }
   0x4   :  { %14 = vsyncpa [#allocation4], 0 }
   0x5   :  { %16 = vsyncpa [#allocation4 + $0x1], 0  ;;  %s1184_s15 = smov 0   ;;  %s1186_s16 = smov 0  }
   0x6   :  { %s1188_s17 = smov 0   ;;  %s1190_s18 = smov 0  }
   0x7 LB: > { %s1205_s19 = sadd.s32 4294967295, %s1144_s18   ;;  %s827_s20 = sadd.s32 4294967294, %s1144_s18   ;;  %s1144_s18 = sphi %s1190_s18, %s1609_s18   ;;  %s1140_s17 = sphi %s1188_s17, %s1608_s17   ;;  %s1136_s16 = sphi %s1186_s16, %s1607_s16   ;;  %s1132_s15 = sphi %s1184_s15, %s1606_s15  }
   0x8   : > { %p42_p0 = scmp.ne.s32.totalorder %s1136_s16, %s1132_s15  ;;  %p43_p1 = scmp.eq.s32.totalorder %s1205_s19, 0 }
   0x9   : > { %p129_p2 = scmp.eq.s32.totalorder %s1205_s19, 1  ;;  %p135_p3 = scmp.eq.s32.totalorder %s827_s20, 1 }
   0xa   : > { %p1214_p4 = por %p43_p1, %p42_p0  ;;  %p828_p5 = scmp.ge.s32.totalorder %s1144_s18, 1 }
   0xb   : > { %p1219_p6 = por %p135_p3, %p42_p0  ;;  %p142_p7 = scmp.lt.s32.totalorder %s1144_s18, 3 }
   0xc   : > { %s154_s25 = sshll.u32 %s1595_s1, 4  ;;  %s1146_s27 = smov [#allocation5]   ;;  %s155_s25 = int_to_ptr.hbm [resolvable:$true] %s154_s25 }
   0xd   : > { %p1227_p8 = pnand %p828_p5, %p142_p7  ;;  %s156_s28 = sshll.u32 %s1146_s27, 4  ;;  %s157_s28 = int_to_ptr.vmem [resolvable:$true] %s156_s28 }
   0xe   : > { %s166_s5 = sshll.u32 %s1596_s2, 4  ;;  %s177_s9 = sshll.u32 %s1597_s3, 4  ;;  %s167_s5 = int_to_ptr.hbm [resolvable:$true] %s166_s5  ;;  %s178_s9 = int_to_ptr.hbm [resolvable:$true] %s177_s9 }
   0xf   : > { %p873_p10 = pneg %p1227_p8  ;;  %s1147_s10 = smov [#allocation7]  }
  0x10   : > { %s168_s11 = sshll.u32 %s1147_s10, 4  ;;  %s1148_s12 = smov [#allocation8]   ;;  %s169_s11 = int_to_ptr.vmem [resolvable:$true] %s168_s11 }
  0x11   : > { %p1239_p11 = pnand %p873_p10, %p43_p1  ;;  %s179_s13 = sshll.u32 %s1148_s12, 4  ;;  %s180_s13 = int_to_ptr.vmem [resolvable:$true] %s179_s13 }
  0x12   : > { %s1149_s14 = smov 256   ;;  %s1150_s20 = smov 16  }
  0x13   : > { %876 = dma.hbm_to_vmem [thread:$0]  (!%p1239_p11), %s155_s25, 64, %s157_s28, [#allocation6]  }
  0x14   : > { %879 = dma.hbm_to_vmem [thread:$0]  (!%p1239_p11), %s167_s5, 64, %s169_s11, [#allocation6]  }
  0x15   : > { %882 = dma.hbm_to_vmem [thread:$0]  (!%p1239_p11), %s178_s9, 512, %s180_s13, [#allocation9], %s1149_s14, %s1149_s14, %s1150_s20  }
  0x16   : > { %s1253_s23 = sadd.s32 1, %s1144_s18   ;;  %s29_s25 = sadd.s32 1, %s1140_s17 }
  0x17   : > { %s26_s24 = ssub.s32 %s1144_s18, %s1253_s23  ;;  %p36_p13 = scmp.ne.s32.totalorder %s1140_s17, %s1136_s16 }
  0x18   : > { %p27_p12 = scmp.eq.s32.totalorder %s26_s24, 0  ;;  %p37_p0 = scmp.eq.s32.totalorder %s1144_s18, 0 }
  0x19   : > { %p1266_p3 = por %p129_p2, %p36_p13  ;;  %p894_p5 = scmp.lt.s32.totalorder %s1144_s18, 2 }
  0x1a   : > { %s1262_s27 = scalar_select %p27_p12, %s1140_s17, %s29_s25  }
  0x1b   : > { %s193_s29 = sand.u32 1, %s1140_s17   ;;  %s855_s30 = sshll.u32 %s1144_s18, 3 }
  0x1c   : > { %p38_p7 = por %p37_p0, %p36_p13  ;;  %s833_s5 = sshll.u32 %s193_s29, 3 }
  0x1d   : > { %s202_s8 = scalar_lea.hbm %s1594_s0, %s855_s30  ;;  %s197_s10 = scalar_lea.vmem [#allocation2], %s833_s5 }
  0x1e   : > { %s204_s9 = sshll.u32 %s202_s8, 4  ;;  %s206_s11 = sshll.u32 %s197_s10, 4  ;;  %s205_s9 = int_to_ptr.hbm [resolvable:$true] %s204_s9  ;;  %s207_s11 = int_to_ptr.vmem [resolvable:$true] %s206_s11 }
  0x1f   : > { %p1276_p10 = pnand %p894_p5, %p38_p7  ;;  %s194_s13 = scalar_lea.sflag [#allocation3], %s193_s29 }
  0x20   : > { %s1040_s14 = sshra.s32 %s205_s9, 4  ;;  %s1047_s30 = scalar_lea.hbm %s1594_s0, 16  ;;  %s1041_s14 = int_to_ptr.hbm [resolvable:$true] %s1040_s14 }
  0x21   : > { %s1042_s20 = scalar_lea.hbm %s1041_s14, 8  ;;  %p1044_p11 = pneg %p1276_p10 }
  0x22   : > { %p1043_p2 = scmp.ne.s32.totalorder %s1041_s14, %s1042_s20  ;;  %p1048_p0 = scmp.lt.s32.totalorder %s1041_s14, %s1594_s0 }
  0x23   : > { %p1049_p5 = scmp.lt.s32.totalorder %s1047_s30, %s1042_s20 }
  0x24   : > { %p1045_p12 = pnand %p1044_p11, %p1043_p2 }
  0x25   : > { %p1050_p7 = por %p1049_p5, %p1048_p0 }
  0x26   : > { %p1046_p13 = pneg %p1045_p12 }
  0x28   : > { %p1051_p9 = pnand %p1050_p7, %p1046_p13 }
  0x2a   : > { %1054 = shalt.err (!%p1051_p9)
}
  0x2b   : > { %886 = dma.hbm_to_vmem [thread:$0]  (!%p1276_p10), %s205_s9, 128, %s207_s11, %s194_s13  }
  0x2c   : > { %215 = sbr.rel (%p1227_p8) target bundleno = 1254 (0x4e6), region = 36  ;;  %s1293_s29 = sand.u32 (!%p1227_p8), 1, %s1136_s16  }
  0x2d   : > { %s837_s7 = sshll.u32 (!%p1227_p8), %s1293_s29, 3  ;;  %s218_s8 = scalar_lea.sflag (!%p1227_p8), [#allocation3], %s1293_s29 }
  0x2e   : > { %s221_s10 = scalar_lea.vmem (!%p1227_p8), [#allocation2], %s837_s7 }
  0x31   : > { %1115 = dma.done.wait (%p1214_p4), %s218_s8, 128  }
  0x32   : > { %1117 = vsyncadd (%p1214_p4), %s218_s8, 4294967168 }
  0x33   : > { %1119 = dma.done.wait (%p43_p1), [#allocation6], 128  }
  0x34   : > { %1121 = vsyncadd (%p43_p1), [#allocation6], 4294967168 }
  0x35   : > { %1123 = dma.done.wait (%p43_p1), [#allocation9], 512  }
  0x36   : > { %1125 = vsyncadd (%p43_p1), [#allocation9], 4294966784  ;;  %v1311_v0 = vld [vmem:[%s221_s10] sm:$0xff]  ;;  %s1151_s21 = smov 16   ;;  %s1152_s26 = smov 15   ;;  %v1337_v17 = vld [vmem:[#allocation8] sm:$0xff]  ;;  %v277_v33 = vlaneseq }
  0x37   : > { %268 = vst [vmem:[#allocation1] ss:$2 sm:$0xff] %v1311_v0  ;;  %s1153_s9 = smov 1   ;;  %s1154_s11 = smov 127   ;;  %v1339_v18 = vld [vmem:[#allocation8 + $0x8] sm:$0xff]  ;;  %v334_v19 = vperm.slane %v1337_v17, 4 }
  0x38   : > { %s1155_s12 = smov 113   ;;  %s1156_s13 = smov 112   ;;  %v335_v20 = vperm.slane %v1339_v18, 4  ;;  %vm339_vm0 = vcmask 1043456   ;;  %v1351_v34 = vand.u32 127, %v277_v33  ;;  %v387_v37 = vperm.slane %v1337_v17, 7 }
  0x39   : > { %s1157_s14 = smov 17   ;;  %s1158_s20 = smov 111   ;;  %v388_v38 = vperm.slane %v1339_v18, 7  ;;  %v355_v39 = vperm.slane %v1337_v17, 5  ;;  %v356_v43 = vperm.slane %v1339_v18, 5  ;;  %v298_v45 = vperm.slane %v1337_v17, 1 }
  0x3a   : > { %v338_v21 = vrot.slane %v335_v20, 4  ;;  %vm384_vm1 = vcmp.lt.s32.totalorder %v1351_v34, 112  ;;  %vm352_vm2 = vcmp.lt.s32.totalorder %v1351_v34, 127  ;;  %v299_v46 = vperm.slane %v1339_v18, 1  ;;  %v1379_v52 = vld [vmem:[#allocation8 + $0x10] ss:$0 sm:$0xff] }
  0x3b   : > { %vm327_vm3 = vcmp.lt.s32.totalorder %v1351_v34, 1  ;;  %vm368_vm4 = vcmp.lt.s32.totalorder %v1351_v34, 113  ;;  %v330_v50 = vperm.slane %v1337_v17, 3  ;;  %vm400_vm5 = vcmp.lt.s32.totalorder %v1351_v34, 111  ;;  %v1381_v53 = vld [vmem:[#allocation8 + $0x18] ss:$0 sm:$0xff] }
  0x3c   : > { %v340_v22 = vsel %vm339_vm0, %v334_v19, %v338_v21  ;;  %v331_v54 = vperm.slane %v1339_v18, 3  ;;  %v371_v55 = vperm.slane %v1337_v17, 6  ;;  %v372_v56 = vperm.slane %v1339_v18, 6  ;;  %s856_s24 = sshll.u32 %s1205_s19, 3  ;;  %s261_s6 = scalar_lea.vmem [#allocation10], %s837_s7 }
  0x3d   : > { %v342_v23 = vmul.f32 %v340_v22, %v1311_v0  ;;  %vm295_vm6 = vcmp.lt.s32.totalorder %v1351_v34, 16  ;;  %vm279_vm7 = vcmp.lt.s32.totalorder %v1351_v34, 17  ;;  %v282_v22 = vperm.slane %v1337_v17, 0  ;;  %s723_s5 = scalar_lea.hbm %s1598_s4, %s856_s24  ;;  %s725_s8 = sshll.u32 %s261_s6, 4  ;;  %s726_s8 = int_to_ptr.vmem [resolvable:$true] %s725_s8 }
  0x3e   : > { %v269_v1 = vld.sshfl [vmem:[#allocation1] sm:$0xff pattern:$0x75316420]  ;;  %v270_v2 = vld.sshfl [vmem:[#allocation1 + $0x8] sm:$0xff pattern:$0x75316420] }
  0x3f   : > { %286 = vst [vmem:[#allocation1] ss:$2 sm:$0xff] %v1311_v0  ;;  %vm311_vm8 = vcmp.lt.s32.totalorder %v1351_v34, 15  ;;  %vm446_vm9 = vcmask 293888   ;;  %s727_s10 = sshll.u32 %s723_s5, 4  ;;  %s712_s19 = scalar_lea.sflag [#allocation4], %s1293_s29  ;;  %s728_s10 = int_to_ptr.hbm [resolvable:$true] %s727_s10 }
  0x40   : > { %s1090_s7 = scalar_lea.hbm %s1598_s4, 16 }
  0x46   : > { %v287_v3 = vld.sshfl [vmem:[#allocation1] sm:$0xff pattern:$0x75316420]  ;;  %v288_v4 = vld.sshfl [vmem:[#allocation1 + $0x8] sm:$0xff pattern:$0x75316420] }
  0x47   : > { %302 = vst [vmem:[#allocation1] ss:$2 sm:$0xff] %v1311_v0  ;;  %291 = vrot.lane.b32.xlu1 %v287_v3, %s1151_s21  ;;  %293 = vrot.lane.b32.xlu2 %v288_v4, %s1151_s21 }
  0x4e   : > { %v303_v5 = vld.sshfl [vmem:[#allocation1] sm:$0xff pattern:$0x75316420]  ;;  %v304_v6 = vld.sshfl [vmem:[#allocation1 + $0x8] sm:$0xff pattern:$0x75316420] }
  0x4f   : > { %307 = vrot.lane.b32.xlu0 %v303_v5, %s1152_s26  ;;  %318 = vst [vmem:[#allocation1] ss:$2 sm:$0xff] %v1311_v0 }
  0x56   : > { %v319_v7 = vld.sshfl [vmem:[#allocation1] sm:$0xff pattern:$0x75316420]  ;;  %v320_v8 = vld.sshfl [vmem:[#allocation1 + $0x8] sm:$0xff pattern:$0x75316420] }
  0x57   : > { %325 = vrot.lane.b32.xlu0 %v320_v8, %s1153_s9  ;;  %343 = vst [vmem:[#allocation1] ss:$2 sm:$0xff] %v1311_v0  ;;  %323 = vrot.lane.b32.xlu2 %v319_v7, %s1153_s9 }
  0x5e   : > { %v344_v9 = vld.sshfl [vmem:[#allocation1] sm:$0xff pattern:$0x75316420]  ;;  %v345_v10 = vld.sshfl [vmem:[#allocation1 + $0x8] sm:$0xff pattern:$0x75316420] }
  0x5f   : > { %359 = vst [vmem:[#allocation1] ss:$2 sm:$0xff] %v1311_v0  ;;  %348 = vrot.lane.b32.xlu2 %v344_v9, %s1154_s11 }
  0x66   : > { %v360_v11 = vld.sshfl [vmem:[#allocation1] sm:$0xff pattern:$0x75316420]  ;;  %v361_v12 = vld.sshfl [vmem:[#allocation1 + $0x8] sm:$0xff pattern:$0x75316420] }
  0x67   : > { %364 = vrot.lane.b32.xlu0 %v360_v11, %s1155_s12  ;;  %366 = vrot.lane.b32.xlu1 %v361_v12, %s1155_s12  ;;  %375 = vst [vmem:[#allocation1] ss:$2 sm:$0xff] %v1311_v0 }
  0x68   : > { %350 = vrot.lane.b32.xlu2 %v345_v10, %s1154_s11 }
  0x6e   : > { %v376_v13 = vld.sshfl [vmem:[#allocation1] sm:$0xff pattern:$0x75316420]  ;;  %v377_v14 = vld.sshfl [vmem:[#allocation1 + $0x8] sm:$0xff pattern:$0x75316420] }
  0x6f   : > { %380 = vrot.lane.b32.xlu0 %v376_v13, %s1156_s13  ;;  %391 = vst [vmem:[#allocation1] ss:$2 sm:$0xff] %v1311_v0 }
  0x70   : > { %273 = vrot.lane.b32.xlu2 %v269_v1, %s1157_s14 }
  0x76   : > { %v392_v15 = vld.sshfl [vmem:[#allocation1] sm:$0xff pattern:$0x75316420]  ;;  %v393_v16 = vld.sshfl [vmem:[#allocation1 + $0x8] sm:$0xff pattern:$0x75316420] }
  0x77   : > { %382 = vrot.lane.b32.xlu0 %v377_v14, %s1156_s13  ;;  %396 = vrot.lane.b32.xlu1 %v392_v15, %s1158_s20  ;;  %420 = vst [vmem:[#allocation1] ss:$2 sm:$0xff] %v342_v23 }
  0x7e   : > { %v421_v15 = vld.sshfl [vmem:[#allocation1] sm:$0xff pattern:$0x75316420] }
  0x7f   : > { %275 = vrot.lane.b32.xlu0 %v270_v2, %s1157_s14  ;;  %398 = vrot.lane.b32.xlu1 %v393_v16, %s1158_s20  ;;  %v422_v16 = vld.sshfl [vmem:[#allocation1 + $0x8] sm:$0xff pattern:$0x75316420] }
  0x87   : > { %309 = vrot.lane.b32.xlu1 %v304_v6, %s1152_s26 }
  0xa1   : > { %v294_v25 = vpop.permute.xlu2 %293 }
  0xb1   : > { %v324_v28 = vpop.permute.xlu2 %323 }
  0xb9   : > { %v292_v27 = vpop.permute.xlu1 %291  ;;  %v349_v31 = vpop.permute.xlu2 %348 }
  0xba   : > { %v296_v10 = vsel %vm295_vm6, %v292_v27, %v294_v25  ;;  %v297_v11 = vsel %vm295_vm6, %v294_v25, %v292_v27  ;;  %v314_v27 = vperm.slane %v1337_v17, 2 }
  0xbb   : > { %v300_v33 = vmul.f32 %v298_v45, %v297_v11 }
  0xc1   : > { %v1349_v24 = vpop.permute.xlu0 %307 }
  0xc2   : > { %v351_v40 = vpop.permute.xlu2 %350 }
  0xc3   : > { %v353_v44 = vsel %vm352_vm2, %v349_v31, %v351_v40  ;;  %v354_v47 = vsel %vm352_vm2, %v351_v40, %v349_v31 }
  0xc4   : > { %v357_v51 = vmul.f32 %v355_v39, %v353_v44  ;;  %v358_v57 = vmul.f32 %v356_v43, %v354_v47 }
  0xc6   : > { %v427_v4 = vrot.slane %v357_v51, 4  ;;  %v428_v9 = vrot.slane %v358_v57, 4  ;;  %v409_v57 = vrot.slane %v300_v33, 4 }
  0xc8   : > { %v441_v31 = vsel %vm339_vm0, %v421_v15, %v427_v4 }
  0xc9   : > { %v326_v26 = vpop.permute.xlu0 %325 }
  0xca   : > { %v329_v58 = vsel %vm327_vm3, %v326_v26, %v324_v28  ;;  %v328_v3 = vsel %vm327_vm3, %v324_v28, %v326_v26  ;;  %v274_v13 = vpop.permute.xlu2 %273  ;;  %v283_v26 = vperm.slane %v1339_v18, 0  ;;  %v315_v28 = vperm.slane %v1339_v18, 2 }
  0xcb   : > { %v332_v12 = vmul.f32 %v330_v50, %v329_v58  ;;  %v333_v21 = vmul.f32 %v331_v54, %v328_v3 }
  0xcd   : > { %v415_v40 = vrot.slane %v332_v12, 4 }
  0xd9   : > { %v365_v29 = vpop.permute.xlu0 %364  ;;  %v367_v30 = vpop.permute.xlu1 %366 }
  0xda   : > { %v369_v59 = vsel %vm368_vm4, %v365_v29, %v367_v30  ;;  %v370_v60 = vsel %vm368_vm4, %v367_v30, %v365_v29 }
  0xdb   : > { %v373_v7 = vmul.f32 %v371_v55, %v369_v59  ;;  %v374_v8 = vmul.f32 %v372_v56, %v370_v60 }
  0xe1   : > { %v381_v32 = vpop.permute.xlu0 %380 }
  0xe9   : > { %v383_v35 = vpop.permute.xlu0 %382  ;;  %v397_v36 = vpop.permute.xlu1 %396 }
  0xea   : > { %v385_v41 = vsel %vm384_vm1, %v381_v32, %v383_v35  ;;  %v386_v42 = vsel %vm384_vm1, %v383_v35, %v381_v32  ;;  %v442_v32 = vsel %vm339_vm0, %v422_v16, %v428_v9  ;;  %v301_v35 = vmul.f32 %v299_v46, %v296_v10 }
  0xeb   : > { %v389_v48 = vmul.f32 %v387_v37, %v385_v41  ;;  %v390_v49 = vmul.f32 %v388_v38, %v386_v42  ;;  %v416_v41 = vrot.slane %v333_v21, 4 }
  0xec   : > { %v410_v58 = vrot.slane %v301_v35, 4 }
  0xed   : > { %v433_v62 = vrot.slane %v389_v48, 4  ;;  %v434_v63 = vrot.slane %v390_v49, 4 }
  0xef   : > { %v443_v23 = vsel %vm339_vm0, %v373_v7, %v433_v62  ;;  %v444_v25 = vsel %vm339_vm0, %v374_v8, %v434_v63 }
  0xf1   : > { %v399_v61 = vpop.permute.xlu1 %398  ;;  %v276_v14 = vpop.permute.xlu0 %275 }
  0xf2   : > { %v401_v1 = vsel %vm400_vm5, %v397_v36, %v399_v61  ;;  %v402_v2 = vsel %vm400_vm5, %v399_v61, %v397_v36  ;;  %v280_v29 = vsel %vm279_vm7, %v274_v13, %v276_v14  ;;  %v281_v30 = vsel %vm279_vm7, %v276_v14, %v274_v13 }
  0xf3   : > { %v405_v5 = vmul.f32 %v1379_v52, %v401_v1  ;;  %v406_v6 = vmul.f32 %v1381_v53, %v402_v2  ;;  %v284_v47 = vmul.f32 %v282_v22, %v281_v30  ;;  %v285_v48 = vmul.f32 %v283_v26, %v280_v29 }
  0xf5   : > { %842 = vmatpush.msk.msra.mxu0 %vm339_vm0, %v405_v5  ;;  %844 = vmatpush.msk.msra.mxu1 %vm339_vm0, %v406_v6  ;;  %v437_v61 = vsel %vm339_vm0, %v284_v47, %v409_v57  ;;  %v438_v62 = vsel %vm339_vm0, %v285_v48, %v410_v58 }
  0xf7   : > { %468 = vmatpush.msra.mxu0 %v443_v23  ;;  %488 = vmatpush.msra.mxu1 %v444_v25 }
  0xf9   : > { %v310_v36 = vpop.permute.xlu1 %309  ;;  %469 = vmatpush.msra.mxu0 %v441_v31  ;;  %489 = vmatpush.msra.mxu1 %v442_v32 }
  0xfa   : > { %v312_v42 = vsel %vm311_vm8, %v1349_v24, %v310_v36  ;;  %v313_v44 = vsel %vm311_vm8, %v310_v36, %v1349_v24  ;;  %v445_v24 = vld [vmem:[#allocation5] sm:$0xf] }
  0xfb   : > { %v316_v49 = vmul.f32 %v314_v27, %v313_v44  ;;  %v317_v51 = vmul.f32 %v315_v28, %v312_v42 }
  0xfd   : > { %v439_v59 = vsel %vm339_vm0, %v316_v49, %v415_v40  ;;  %v440_v60 = vsel %vm339_vm0, %v317_v51, %v416_v41 }
  0xfe   : > { %470 = vmatpush.msra.mxu0 %v439_v59  ;;  %490 = vmatpush.msra.mxu1 %v440_v60 }
 0x100   : > { %471 = vmatpush.msra.mxu0 %v437_v61  ;;  %491 = vmatpush.msra.mxu1 %v438_v62 }
 0x101   : > { %843 = vmatmul.msk.f32.vlgmr.msra.gmra.mxu0 %vm446_vm9, %v445_v24  ;;  %845 = vmatmul.msk.f32.vlgmr.msra.gmra.mxu1 %vm446_vm9, %v445_v24 }
 0x17e   : > { %v473_v63 = vpop.f32.mrf.mxu0  ;;  %v493_v1 = vpop.f32.mrf.mxu1 }
 0x17f   : > { %v496_v2 = vsel %vm339_vm0, %v473_v63, 0.0  ;;  %v497_v3 = vsel %vm339_vm0, %v493_v1, 0.0 }
 0x180   : > { %v498_v4 = vadd.f32 %v497_v3, %v496_v2 }
 0x182   : > { %499 = vadd.xlane.f32.xlu1 %v498_v4 }
 0x1f5   : > { %v500_v5 = vpop.xlane.xlu1 %499 }
 0x1f6   : > { %v501_v6 = vmul.f32 0.00390625, %v500_v5 }
 0x1f8   : > { %v502_v7 = vsub.f32 %v473_v63, %v501_v6  ;;  %v503_v8 = vsub.f32 %v493_v1, %v501_v6 }
 0x1fa   : > { %v504_v9 = vmul.f32 %v502_v7, %v502_v7  ;;  %v505_v10 = vmul.f32 %v503_v8, %v503_v8 }
 0x1fc   : > { %v506_v11 = vsel %vm339_vm0, %v504_v9, 0.0  ;;  %v507_v12 = vsel %vm339_vm0, %v505_v10, 0.0 }
 0x1fd   : > { %v508_v13 = vadd.f32 %v507_v12, %v506_v11 }
 0x1ff   : > { %509 = vadd.xlane.f32.xlu2 %v508_v13 }
 0x272   : > { %v510_v14 = vpop.xlane.xlu2 %509 }
 0x273   : > { %v511_v15 = vmul.f32 0.00390625, %v510_v14 }
 0x275   : > { %v512_v16 = vadd.f32 1e-05, %v511_v15 }
 0x277   : > { %946 = vrsqrt.f32 %v512_v16  ;;  %vm519_vm11 = vweird.f32 %v512_v16 }
 0x27d   : > { %v947_v21 = vpop.eup %946 }
 0x27e   : > { %v514_v23 = vmul.f32 %v947_v21, %v512_v16  ;;  %vm520_vm10 = vweird.f32 %v947_v21 }
 0x27f   : > { %vm521_vm12 = vmor %vm519_vm11, %vm520_vm10 }
 0x280   : > { %v515_v25 = vmul.f32 %v947_v21, %v514_v23 }
 0x282   : > { %v516_v29 = vmul.f32 0.5, %v515_v25 }
 0x284   : > { %v517_v30 = vsub.f32 1.5, %v516_v29 }
 0x286   : > { %v518_v31 = vmul.f32 %v947_v21, %v517_v30 }
 0x288   : > { %v522_v32 = vsel %vm521_vm12, %v947_v21, %v518_v31 }
 0x289   : > { %v523_v33 = vmul.f32 %v522_v32, %v502_v7  ;;  %v524_v35 = vmul.f32 %v522_v32, %v503_v8 }
 0x28b   : > { %v525_v36 = vmax.f32 %v523_v33, 0.0  ;;  %v526_v40 = vmax.f32 %v524_v35, 0.0 }
 0x28d   : > { %563 = vrot.lane.b32.xlu2 %v526_v40, %s1154_s11  ;;  %569 = vrot.lane.b32.xlu1 %v525_v36, %s1155_s12  ;;  %v559_v10 = vmul.f32 %v525_v36, %v334_v19  ;;  %v560_v11 = vmul.f32 %v526_v40, %v335_v20 }
 0x28e   : > { %577 = vrot.lane.b32.xlu0 %v525_v36, %s1156_s13 }
 0x295   : > { %535 = vrot.lane.b32.xlu2 %v525_v36, %s1151_s21  ;;  %537 = vrot.lane.b32.xlu1 %v526_v40, %s1151_s21  ;;  %s1084_s21 = sshra.s32 %s728_s10, 4  ;;  %s1085_s21 = int_to_ptr.hbm [resolvable:$true] %s1084_s21 }
 0x296   : > { %579 = vrot.lane.b32.xlu0 %v526_v40, %s1156_s13  ;;  %p1091_p9 = scmp.lt.s32.totalorder %s1085_s21, %s1598_s4 }
 0x29d   : > { %545 = vrot.lane.b32.xlu2 %v526_v40, %s1152_s26  ;;  %527 = vrot.lane.b32.xlu1 %v525_v36, %s1157_s14 }
 0x29e   : > { %585 = vrot.lane.b32.xlu0 %v525_v36, %s1158_s20 }
 0x2a6   : > { %587 = vrot.lane.b32.xlu0 %v526_v40, %s1158_s20 }
 0x2ae   : > { %561 = vrot.lane.b32.xlu0 %v525_v36, %s1154_s11 }
 0x2b6   : > { %571 = vrot.lane.b32.xlu0 %v526_v40, %s1155_s12 }
 0x2be   : > { %551 = vrot.lane.b32.xlu0 %v525_v36, %s1153_s9 }
 0x2c6   : > { %553 = vrot.lane.b32.xlu0 %v526_v40, %s1153_s9 }
 0x2ce   : > { %543 = vrot.lane.b32.xlu0 %v525_v36, %s1152_s26  ;;  %s1086_s26 = scalar_lea.hbm %s1085_s21, 8 }
 0x2cf   : > { %p1087_p1 = scmp.ne.s32.totalorder %s1085_s21, %s1086_s26  ;;  %p1092_p10 = scmp.lt.s32.totalorder %s1090_s7, %s1086_s26 }
 0x2d1   : > { %p1088_p4 = pnand %p1087_p1, %p1266_p3  ;;  %p1093_p2 = por %p1092_p10, %p1091_p9 }
 0x2d3   : > { %p1089_p8 = pneg %p1088_p4 }
 0x2d5   : > { %p1094_p11 = pnand %p1093_p2, %p1089_p8 }
 0x2d6   : > { %529 = vrot.lane.b32.xlu0 %v526_v40, %s1157_s14 }
 0x2e7   : > { %v564_v59 = vpop.permute.xlu2 %563 }
 0x2ff   : > { %v570_v2 = vpop.permute.xlu1 %569 }
 0x300   : > { %v578_v41 = vpop.permute.xlu0 %577 }
 0x307   : > { %v538_v16 = vpop.permute.xlu1 %537 }
 0x308   : > { %v580_v42 = vpop.permute.xlu0 %579 }
 0x309   : > { %v581_v60 = vsel %vm384_vm1, %v578_v41, %v580_v42  ;;  %v582_v24 = vsel %vm384_vm1, %v580_v42, %v578_v41 }
 0x30a   : > { %v584_v62 = vmul.f32 %v582_v24, %v388_v38 }
 0x30c   : > { %v614_v5 = vrot.slane %v584_v62, 4 }
 0x30f   : > { %v528_v42 = vpop.permute.xlu1 %527 }
 0x310   : > { %v586_v44 = vpop.permute.xlu0 %585 }
 0x318   : > { %v588_v47 = vpop.permute.xlu0 %587 }
 0x319   : > { %v589_v48 = vsel %vm400_vm5, %v586_v44, %v588_v47  ;;  %v590_v49 = vsel %vm400_vm5, %v588_v47, %v586_v44 }
 0x31a   : > { %v591_v51 = vmul.f32 %v1379_v52, %v589_v48  ;;  %v592_v57 = vmul.f32 %v1381_v53, %v590_v49  ;;  %v583_v53 = vmul.f32 %v581_v60, %v387_v37 }
 0x31c   : > { %846 = vmatpush.msk.msra.mxu2 %vm339_vm0, %v591_v51  ;;  %848 = vmatpush.msk.msra.mxu3 %vm339_vm0, %v592_v57  ;;  %v613_v4 = vrot.slane %v583_v53, 4 }
 0x320   : > { %v562_v58 = vpop.permute.xlu0 %561 }
 0x321   : > { %v565_v61 = vsel %vm352_vm2, %v562_v58, %v564_v59  ;;  %v566_v52 = vsel %vm352_vm2, %v564_v59, %v562_v58 }
 0x322   : > { %v567_v63 = vmul.f32 %v565_v61, %v355_v39  ;;  %v568_v1 = vmul.f32 %v566_v52, %v356_v43 }
 0x324   : > { %v607_v37 = vrot.slane %v567_v63, 4  ;;  %v608_v8 = vrot.slane %v568_v1, 4 }
 0x326   : > { %v621_v12 = vsel %vm339_vm0, %v559_v10, %v607_v37  ;;  %v622_v13 = vsel %vm339_vm0, %v560_v11, %v608_v8 }
 0x328   : > { %v572_v3 = vpop.permute.xlu0 %571 }
 0x329   : > { %v573_v6 = vsel %vm368_vm4, %v570_v2, %v572_v3  ;;  %v574_v7 = vsel %vm368_vm4, %v572_v3, %v570_v2 }
 0x32a   : > { %v575_v38 = vmul.f32 %v573_v6, %v371_v55  ;;  %v576_v39 = vmul.f32 %v574_v7, %v372_v56  ;;  %v536_v56 = vpop.permute.xlu2 %535 }
 0x32c   : > { %v623_v43 = vsel %vm339_vm0, %v575_v38, %v613_v4  ;;  %v624_v9 = vsel %vm339_vm0, %v576_v39, %v614_v5 }
 0x32d   : > { %647 = vmatpush.msra.mxu2 %v623_v43  ;;  %667 = vmatpush.msra.mxu3 %v624_v9 }
 0x32f   : > { %648 = vmatpush.msra.mxu2 %v621_v12  ;;  %668 = vmatpush.msra.mxu3 %v622_v13 }
 0x330   : > { %v552_v55 = vpop.permute.xlu0 %551 }
 0x332   : > { %v546_v23 = vpop.permute.xlu2 %545 }
 0x338   : > { %v554_v14 = vpop.permute.xlu0 %553 }
 0x339   : > { %v555_v15 = vsel %vm327_vm3, %v552_v55, %v554_v14  ;;  %v556_v19 = vsel %vm327_vm3, %v554_v14, %v552_v55 }
 0x33a   : > { %v557_v20 = vmul.f32 %v556_v19, %v330_v50  ;;  %v558_v21 = vmul.f32 %v555_v15, %v331_v54  ;;  %v539_v50 = vsel %vm295_vm6, %v536_v56, %v538_v16  ;;  %v540_v54 = vsel %vm295_vm6, %v538_v16, %v536_v56 }
 0x33b   : > { %v541_v41 = vmul.f32 %v540_v54, %v298_v45  ;;  %v625_v45 = vld [vmem:[#allocation7] sm:$0xf] }
 0x33c   : > { %v601_v31 = vrot.slane %v557_v20, 4  ;;  %v602_v32 = vrot.slane %v558_v21, 4 }
 0x33d   : > { %v595_v48 = vrot.slane %v541_v41, 4 }
 0x340   : > { %v544_v25 = vpop.permute.xlu0 %543 }
 0x341   : > { %v547_v29 = vsel %vm311_vm8, %v544_v25, %v546_v23  ;;  %v548_v30 = vsel %vm311_vm8, %v546_v23, %v544_v25 }
 0x342   : > { %v549_v33 = vmul.f32 %v548_v30, %v314_v27  ;;  %v550_v35 = vmul.f32 %v547_v29, %v315_v28  ;;  %v542_v27 = vmul.f32 %v539_v50, %v299_v46 }
 0x344   : > { %v619_v36 = vsel %vm339_vm0, %v549_v33, %v601_v31  ;;  %v620_v40 = vsel %vm339_vm0, %v550_v35, %v602_v32  ;;  %v596_v49 = vrot.slane %v542_v27, 4 }
 0x345   : > { %649 = vmatpush.msra.mxu2 %v619_v36  ;;  %669 = vmatpush.msra.mxu3 %v620_v40 }
 0x348   : > { %v530_v28 = vpop.permute.xlu0 %529 }
 0x349   : > { %v531_v44 = vsel %vm279_vm7, %v528_v42, %v530_v28  ;;  %v532_v47 = vsel %vm279_vm7, %v530_v28, %v528_v42 }
 0x34a   : > { %v533_v51 = vmul.f32 %v532_v47, %v282_v22  ;;  %v534_v57 = vmul.f32 %v531_v44, %v283_v26 }
 0x34c   : > { %v617_v58 = vsel %vm339_vm0, %v533_v51, %v595_v48  ;;  %v618_v46 = vsel %vm339_vm0, %v534_v57, %v596_v49 }
 0x34d   : > { %650 = vmatpush.msra.mxu2 %v617_v58  ;;  %670 = vmatpush.msra.mxu3 %v618_v46 }
 0x34e   : > { %847 = vmatmul.msk.f32.vlgmr.msra.gmra.mxu2 %vm446_vm9, %v625_v45  ;;  %849 = vmatmul.msk.f32.vlgmr.msra.gmra.mxu3 %vm446_vm9, %v625_v45 }
 0x3d1   : > { %v652_v34 = vpop.f32.mrf.mxu2  ;;  %v672_v59 = vpop.f32.mrf.mxu3 }
 0x3d2   : > { %v675_v60 = vsel %vm339_vm0, %v652_v34, 0.0  ;;  %v676_v17 = vsel %vm339_vm0, %v672_v59, 0.0 }
 0x3d3   : > { %v677_v22 = vadd.f32 %v676_v17, %v675_v60 }
 0x3d5   : > { %678 = vadd.xlane.f32.xlu2 %v677_v22 }
 0x448   : > { %v679_v18 = vpop.xlane.xlu2 %678 }
 0x449   : > { %v680_v26 = vmul.f32 0.00390625, %v679_v18 }
 0x44b   : > { %v681_v24 = vsub.f32 %v652_v34, %v680_v26  ;;  %v682_v61 = vsub.f32 %v672_v59, %v680_v26 }
 0x44d   : > { %v683_v52 = vmul.f32 %v681_v24, %v681_v24  ;;  %v684_v53 = vmul.f32 %v682_v61, %v682_v61 }
 0x44f   : > { %v685_v62 = vsel %vm339_vm0, %v683_v52, 0.0  ;;  %v686_v63 = vsel %vm339_vm0, %v684_v53, 0.0 }
 0x450   : > { %v687_v1 = vadd.f32 %v686_v63, %v685_v62 }
 0x452   : > { %688 = vadd.xlane.f32.xlu1 %v687_v1 }
 0x4c5   : > { %v689_v2 = vpop.xlane.xlu1 %688 }
 0x4c6   : > { %v690_v3 = vmul.f32 0.00390625, %v689_v2 }
 0x4c8   : > { %v691_v4 = vadd.f32 1e-05, %v690_v3 }
 0x4ca   : > { %948 = vrsqrt.f32 %v691_v4  ;;  %vm698_vm14 = vweird.f32 %v691_v4 }
 0x4d0   : > { %v949_v5 = vpop.eup %948 }
 0x4d1   : > { %v693_v6 = vmul.f32 %v949_v5, %v691_v4  ;;  %vm699_vm13 = vweird.f32 %v949_v5 }
 0x4d2   : > { %vm700_vm15 = vmor %vm698_vm14, %vm699_vm13 }
 0x4d3   : > { %v694_v7 = vmul.f32 %v949_v5, %v693_v6 }
 0x4d5   : > { %v695_v37 = vmul.f32 0.5, %v694_v7 }
 0x4d7   : > { %v696_v8 = vsub.f32 1.5, %v695_v37 }
 0x4d9   : > { %v697_v38 = vmul.f32 %v949_v5, %v696_v8 }
 0x4db   : > { %v701_v39 = vsel %vm700_vm15, %v949_v5, %v697_v38 }
 0x4dc   : > { %v703_v43 = vmul.f32 %v701_v39, %v682_v61  ;;  %v702_v9 = vmul.f32 %v701_v39, %v681_v24 }
 0x4de   : > { %v706_v10 = vrot.slane %v703_v43, 4 }
 0x4e0   : > { %v707_v11 = vsel %vm339_vm0, %v702_v9, %v706_v10 }
 0x4e1   : > { %v709_v12 = vadd.f32 %v707_v11, %v1311_v0 }
 0x4e3   : > { %710 = vst [vmem:[%s261_s6] sm:$0xff] %v709_v12 }
 0x4e4   : > { %1097 = shalt.err (!%p1094_p11)
}
 0x4e5   : > { %871 = dma.vmem_to_hbm [thread:$0]  (%p1266_p3), %s726_s8, 128, %s728_s10, %s712_s19  }
 0x4e6 PF: > { %s739_s29 = sand.u32 1, %s1132_s15   ;;  %p1605_p12 = scmp.ge.s32.totalorder %s1144_s18, 2 }
 0x4e7   : > { %s740_s14 = scalar_lea.sflag [#allocation4], %s739_s29 }
 0x4e8   : > { %p888_p13 = pnand %p1605_p12, %p1219_p6 }
 0x4ea   : > { %p889_p0 = pneg %p888_p13 }
 0x4ec   : > { %1127 = dma.done.wait (%p889_p0), %s740_s14, 128  }
 0x4ed   : > { %1129 = vsyncadd (%p889_p0), %s740_s14, 4294967168  ;;  %p19_p5 = scmp.ge.s32.totalorder %s1253_s23, 4   ;;  %s1606_s15 = smov %s1136_s16 }
 0x4ee   : > { %s1607_s16 = smov %s1140_s17  ;;  %s1608_s17 = smov %s1262_s27 }
 0x4ef   : > { %s1609_s18 = smov %s1253_s23  ;;  %21 = sbr.rel (!%p19_p5) target bundleno = 7 (0x7), region = 93 }
 0x4f4   :  { %746 = vsyncpa [#allocation3], 1 }
 0x4f5   :  { %748 = vsyncpa [#allocation3 + $0x1], 1 }
 0x4f6   :  { %749 = vsyncpa [#allocation6], 1 }
 0x4f7   :  { %750 = vsyncpa [#allocation9], 1 }
 0x4f8   :  { %751 = vsyncpa [#allocation4], 1 }
 0x4f9   :  { %753 = vsyncpa [#allocation4 + $0x1], 1 }

</bundles_post_ra>
